<compile_context>
chip_gen: v7x
topology: tpu7x:2x2x1
jax: 0.10.0
libtpu: 0.0.40
codegen_flags: <defaults>
</compile_context>

<pallas_src>
import functools

import jax
import jax.numpy as jnp
from jax.experimental import pallas as pl
from jax.experimental.pallas import tpu as pltpu

LANES = 128
_TARGET_TILE_BYTES = 1 << 20    # ~1 MiB per input per pipeline buffer


def _round_up(x, m):
    return ((x + m - 1) // m) * m


def _sublane_multiple(dtype):
    # Native packed tile: (8,128) for 4-byte, (16,128) for 2-byte, (32,128) for 1-byte.
    itemsize = jnp.dtype(dtype).itemsize
    return max(8, 32 // max(1, itemsize))


def _num_tensorcores():
    """Best-effort TensorCores-per-chip; falls back to 1 (always safe/correct)."""
    try:
        dev = jax.devices()[0]
        for attr in ("num_cores", "core_count"):
            n = getattr(dev, attr, None)
            if n is not None:
                n = int(n)
                if n > 0:
                    return n
        info = pltpu.get_tpu_info()
        for attr in ("num_cores", "tensorcore_count", "num_tensorcores",
                     "cores_per_chip"):
            n = getattr(info, attr, None)
            if n is not None:
                n = int(n)
                if n > 0:
                    return n
    except Exception:
        pass
    return 1


def _int_pow(x, n):
    """x ** n for static non-negative integer n via repeated squaring (VPU only)."""
    result = None
    base = x
    while n > 0:
        if n & 1:
            result = base if result is None else result * base
        n >>= 1
        if n:
            base = base * base
    if result is None:
        return jnp.ones_like(x)
    return result


def _focal_loss_kernel(p_ref, t_ref, out_ref, *, alpha, gamma, tile_rows,
                       steps, full_rows, tail, n_clean_blocks, needs_mask,
                       binary_targets):
    c = pl.program_id(0)   # shard axis (one per TensorCore)
    i = pl.program_id(1)   # reduction axis (revisits the (8,128) output block)

    # Per-shard (8, 128) vector accumulator lives in the output block.
    @pl.when(i == 0)
    def _():
        out_ref[...] = jnp.zeros_like(out_ref)

    p = p_ref[...].astype(jnp.float32)
    t_raw = t_ref[...]

    if binary_targets:
        # Targets in {0,1}: one boolean mask drives pt and alpha_t, and
        # F.binary_cross_entropy (with PyTorch's -100 log clamp) reduces to a
        # single clamped log(pt): 1 transcendental / element.
        pos = t_raw if t_raw.dtype == jnp.bool_ else (t_raw != 0)
        pt = jnp.where(pos, p, 1.0 - p)
        alpha_t = jnp.where(pos, jnp.float32(alpha), jnp.float32(1.0 - alpha))
        bce = -jnp.maximum(jnp.log(pt), -100.0)
    else:
        # General (soft-target) PyTorch binary_cross_entropy semantics.
        t = t_raw.astype(jnp.float32)
        pt = jnp.where(t == 1.0, p, 1.0 - p)
        alpha_t = alpha * t + (1.0 - alpha) * (1.0 - t)
        log_p = jnp.maximum(jnp.log(p), -100.0)
        log_1mp = jnp.maximum(jnp.log(1.0 - p), -100.0)
        bce = -(t * log_p + (1.0 - t) * log_1mp)

    one_minus_pt = 1.0 - pt
    if float(gamma).is_integer() and gamma >= 0:
        mod = _int_pow(one_minus_pt, int(gamma))   # VPU repeated squaring
    else:
        mod = one_minus_pt ** gamma                # EUP fallback
    focal = alpha_t * mod * bce

    def _fold(x):
        # (tile_rows, 128) -> (8, 128) partial sums: pure VALU vreg adds.
        return jnp.sum(x.reshape(tile_rows // 8, 8, LANES), axis=0)

    if not needs_mask:
        # Fast path: no ragged tail, no row overhang, no shard padding.
        out_ref[...] += _fold(focal)
    else:
        block_idx = c * steps + i

        # Steady-state interior blocks: unmasked accumulate (no iota work).
        @pl.when(block_idx < n_clean_blocks)
        def _():
            out_ref[...] += _fold(focal)

        # Only ragged / overhanging / clamped shard-padding blocks pay for the
        # logical-index mask (garbage padded data is discarded by the select).
        @pl.when(block_idx >= n_clean_blocks)
        def _():
            row = jax.lax.broadcasted_iota(jnp.int32, (tile_rows, LANES), 0)
            global_row = block_idx * tile_rows + row
            if tail == 0:
                valid = global_row < full_rows
            else:
                lane = jax.lax.broadcasted_iota(jnp.int32, (tile_rows, LANES), 1)
                valid = (global_row < full_rows) | (
                    (global_row == full_rows) & (lane < tail))
            out_ref[...] += _fold(jnp.where(valid, focal, 0.0))


def focal_loss(probs, targets, *, alpha=0.5, gamma=4, reduction="mean",
               binary_targets=True):
    """Pallas TPU implementation of FocalLoss.forward ('mean' / 'sum').

    binary_targets=True enables the single-log BCE fast path; it is exactly
    equal to the reference when targets are {0,1} labels (as in this GNN
    loss).  Pass False for soft targets to use the faithful two-log blend.
    Inputs may be bf16/f32 probs and bool/int8/float targets; they are kept
    in their native dtype on HBM and cast inside the kernel.
    """
    assert probs.shape == targets.shape
    n_elems = probs.size
    assert n_elems > 0

    p_flat = probs.reshape(-1)
    t_flat = targets.reshape(-1)
    if n_elems % LANES != 0:
        # Tiny lane pad only in the ragged case; padded values are irrelevant
        # because the kernel masks by logical element index.
        pad = LANES - (n_elems % LANES)
        p_flat = jnp.pad(p_flat, (0, pad))
        t_flat = jnp.pad(t_flat, (0, pad))
    rows = p_flat.size // LANES
    p2d = p_flat.reshape(rows, LANES)
    t2d = t_flat.reshape(rows, LANES)

    # Dtype-aware sublane rounding + ~1 MiB/input/buffer tile sizing.
    mult = max(_sublane_multiple(p2d.dtype), _sublane_multiple(t2d.dtype))
    max_itemsize = max(jnp.dtype(p2d.dtype).itemsize,
                       jnp.dtype(t2d.dtype).itemsize)
    tile_cap = max(2048, _TARGET_TILE_BYTES // (LANES * max_itemsize))
    tile_cap = max(mult, (tile_cap // mult) * mult)
    tile_rows = min(tile_cap, _round_up(rows, mult))

    total_blocks = pl.cdiv(rows, tile_rows)
    num_shards = max(1, min(_num_tensorcores(), total_blocks))
    steps = pl.cdiv(total_blocks, num_shards)
    last_block = total_blocks - 1

    full_rows = n_elems // LANES
    tail = n_elems % LANES
    n_clean_blocks = full_rows // tile_rows
    needs_mask = (tail != 0) or (rows % tile_rows != 0) or \
                 (total_blocks % num_shards != 0)

    def in_index_map(c, i):
        # Clamp so shard-padding iterations re-read the last real block; they
        # are fully masked inside the kernel.
        return (jnp.minimum(c * steps + i, last_block), 0)

    kernel = functools.partial(
        _focal_loss_kernel,
        alpha=float(alpha), gamma=gamma, tile_rows=tile_rows, steps=steps,
        full_rows=full_rows, tail=tail, n_clean_blocks=n_clean_blocks,
        needs_mask=needs_mask, binary_targets=bool(binary_targets))

    if num_shards > 1:
        # Real per-TensorCore split on multi-TC chips (v7x).
        dim_sem = (pltpu.CORE_PARALLEL, pltpu.ARBITRARY)
    else:
        dim_sem = (pltpu.ARBITRARY, pltpu.ARBITRARY)

    p_tile_bytes = tile_rows * LANES * jnp.dtype(p2d.dtype).itemsize
    t_tile_bytes = tile_rows * LANES * jnp.dtype(t2d.dtype).itemsize
    acc_bytes = num_shards * 8 * LANES * 4
    vmem_limit = int(min(
        48 << 20,
        max(16 << 20, 2 * (p_tile_bytes + t_tile_bytes) + acc_bytes + (2 << 20))))

    cost = pl.CostEstimate(
        flops=12 * n_elems,
        transcendentals=(n_elems if binary_targets else 2 * n_elems),
        bytes_accessed=int(p2d.size * jnp.dtype(p2d.dtype).itemsize
                           + t2d.size * jnp.dtype(t2d.dtype).itemsize
                           + acc_bytes))

    partials = pl.pallas_call(
        kernel,
        out_shape=jax.ShapeDtypeStruct((num_shards * 8, LANES), jnp.float32),
        grid_spec=pltpu.PrefetchScalarGridSpec(
            num_scalar_prefetch=0,
            grid=(num_shards, steps),
            in_specs=[
                pl.BlockSpec((tile_rows, LANES), in_index_map),
                pl.BlockSpec((tile_rows, LANES), in_index_map),
            ],
            out_specs=pl.BlockSpec((8, LANES), lambda c, i: (c, 0)),
        ),
        compiler_params=pltpu.CompilerParams(
            dimension_semantics=dim_sem,
            vmem_limit_bytes=vmem_limit),
        cost_estimate=cost,
    )(p2d, t2d)

    total = jnp.sum(partials, dtype=jnp.float32)
    if reduction == "mean":
        return total / jnp.float32(n_elems)
    if reduction == "sum":
        return total
    # TODO(synk): reduction='none' (full per-element focal map output) not
    # wired up; the module default ('mean') and 'sum' are implemented here.
    raise NotImplementedError("reduction='none' not implemented")


def _focal_loss_ref(probs, targets, alpha=0.5, gamma=4, reduction="mean"):
    # Faithful (two-log) reference matching F.binary_cross_entropy semantics.
    p = probs.astype(jnp.float32)
    t = targets.astype(jnp.float32)
    bce = -(t * jnp.maximum(jnp.log(p), -100.0)
            + (1.0 - t) * jnp.maximum(jnp.log(1.0 - p), -100.0))
    pt = jnp.where(t == 1.0, p, 1.0 - p)
    alpha_t = alpha * t + (1.0 - alpha) * (1.0 - t)
    fl = alpha_t * (1.0 - pt) ** gamma * bce
    return jnp.mean(fl) if reduction == "mean" else jnp.sum(fl)


if __name__ == "__main__":
    key = jax.random.PRNGKey(0)
    k1, k2, k3, k4 = jax.random.split(key, 4)

    # Primary case: NCHW sigmoid probs + binary targets (module default 'mean').
    x = jax.random.normal(k1, (2, 4, 16, 16), dtype=jnp.float32)
    probs = jax.nn.sigmoid(x)
    targets = (jax.random.uniform(k2, (2, 4, 16, 16)) > 0.5).astype(jnp.float32)
    out = jax.block_until_ready(
        focal_loss(probs, targets, alpha=0.5, gamma=4, reduction="mean"))
    ref = _focal_loss_ref(probs, targets, reduction="mean")
    assert jnp.allclose(out, ref, rtol=1e-5, atol=1e-6), (out, ref)

    # Ragged case: element count not a multiple of 128 and rows not a multiple
    # of the sublane tile -> exercises the masked last-block path ('sum').
    xr = jax.random.normal(k3, (2, 5, 9, 13), dtype=jnp.float32)
    probs_r = jax.nn.sigmoid(xr)
    targets_r = (jax.random.uniform(k4, (2, 5, 9, 13)) > 0.5).astype(jnp.float32)
    out_r = jax.block_until_ready(focal_loss(probs_r, targets_r, reduction="sum"))
    ref_r = _focal_loss_ref(probs_r, targets_r, reduction="sum")
    assert jnp.allclose(out_r, ref_r, rtol=1e-5, atol=1e-5), (out_r, ref_r)

    print("KERNEL_OK")
</pallas_src>

<mosaic_0001>
module attributes {stable_mosaic.version = 11 : i64} {
  func.func @_focal_loss_kernel(%arg0: i32, %arg1: i32, %arg2: memref<16x128xf32, #tpu.memory_space<vmem>>, %arg3: memref<16x128xf32, #tpu.memory_space<vmem>>, %arg4: memref<8x128xf32, #tpu.memory_space<vmem>>) attributes {dimension_semantics = [#tpu.dimension_semantics<arbitrary>, #tpu.dimension_semantics<arbitrary>], iteration_bounds = array<i64: 1, 1>, scalar_prefetch = 0 : i64, scratch_operands = 0 : i64, tpu.core_type = #tpu.core_type<tc>, window_params = [{transform_indices = @transform_0, window_bounds = array<i64: 16, 128>}, {transform_indices = @transform_1, window_bounds = array<i64: 16, 128>}, {transform_indices = @transform_2, window_bounds = array<i64: 8, 128>}]} {
    %c0_i32 = arith.constant 0 : i32
    %0 = arith.cmpi eq, %arg1, %c0_i32 : i32
    %1 = arith.extui %0 : i1 to i32
    %c0_i32_0 = arith.constant 0 : i32
    %2 = arith.cmpi ne, %1, %c0_i32_0 : i32
    scf.if %2 {
      %cst_15 = arith.constant 0.000000e+00 : f32
      %29 = vector.broadcast %cst_15 : f32 to vector<8x128xf32>
      %c0_16 = arith.constant 0 : index
      %c0_17 = arith.constant 0 : index
      %30 = vector.load %arg4[%c0_16, %c0_17] : memref<8x128xf32, #tpu.memory_space<vmem>>, vector<8x128xf32>
      tpu.vector_store %arg4[%c0_16, %c0_17], %29 {strides = array<i32>} : memref<8x128xf32, #tpu.memory_space<vmem>>, vector<8x128xf32>,
    } else {
    }
    %c0 = arith.constant 0 : index
    %c0_1 = arith.constant 0 : index
    %3 = vector.load %arg2[%c0, %c0_1] : memref<16x128xf32, #tpu.memory_space<vmem>>, vector<16x128xf32>
    %c0_2 = arith.constant 0 : index
    %c0_3 = arith.constant 0 : index
    %4 = vector.load %arg3[%c0_2, %c0_3] : memref<16x128xf32, #tpu.memory_space<vmem>>, vector<16x128xf32>
    %cst = arith.constant 0.000000e+00 : f32
    %5 = vector.broadcast %cst : f32 to vector<16x128xf32>
    %6 = arith.cmpf one, %4, %5 : vector<16x128xf32>
    %cst_4 = arith.constant 1.000000e+00 : f32
    %7 = vector.broadcast %cst_4 : f32 to vector<16x128xf32>
    %8 = arith.subf %7, %3 : vector<16x128xf32>
    %9 = arith.select %6, %3, %8 : vector<16x128xi1>, vector<16x128xf32>
    %cst_5 = arith.constant 5.000000e-01 : f32
    %cst_6 = arith.constant 5.000000e-01 : f32
    %10 = vector.broadcast %cst_5 : f32 to vector<16x128xf32>
    %11 = vector.broadcast %cst_6 : f32 to vector<16x128xf32>
    %12 = arith.select %6, %10, %11 : vector<16x128xi1>, vector<16x128xf32>
    %13 = math.log %9 : vector<16x128xf32>
    %cst_7 = arith.constant -1.000000e+02 : f32
    %14 = vector.broadcast %cst_7 : f32 to vector<16x128xf32>
    %15 = arith.maximumf %13, %14 : vector<16x128xf32>
    %cst_8 = arith.constant 0.000000e+00 : f32
    %16 = vector.broadcast %cst_8 : f32 to vector<16x128xf32>
    %17 = arith.subf %16, %15 : vector<16x128xf32>
    %cst_9 = arith.constant 1.000000e+00 : f32
    %18 = vector.broadcast %cst_9 : f32 to vector<16x128xf32>
    %19 = arith.subf %18, %9 : vector<16x128xf32>
    %20 = arith.mulf %19, %19 : vector<16x128xf32>
    %21 = arith.mulf %20, %20 : vector<16x128xf32>
    %22 = arith.mulf %12, %21 : vector<16x128xf32>
    %23 = arith.mulf %22, %17 : vector<16x128xf32>
    %c0_10 = arith.constant 0 : index
    %c0_11 = arith.constant 0 : index
    %24 = vector.load %arg4[%c0_10, %c0_11] : memref<8x128xf32, #tpu.memory_space<vmem>>, vector<8x128xf32>
    %25 = vector.shape_cast %23 : vector<16x128xf32> to vector<2x8x128xf32>
    %cst_12 = arith.constant dense<0.000000e+00> : vector<8x128xf32>
    %26 = vector.multi_reduction <add>, %25, %cst_12 [0] : vector<2x8x128xf32> to vector<8x128xf32>
    %27 = arith.addf %24, %26 : vector<8x128xf32>
    %c0_13 = arith.constant 0 : index
    %c0_14 = arith.constant 0 : index
    %28 = vector.load %arg4[%c0_13, %c0_14] : memref<8x128xf32, #tpu.memory_space<vmem>>, vector<8x128xf32>
    tpu.vector_store %arg4[%c0_13, %c0_14], %27 {strides = array<i32>} : memref<8x128xf32, #tpu.memory_space<vmem>>, vector<8x128xf32>,
    return
  }
  func.func @transform_0(%arg0: i32, %arg1: i32) -> (i32, i32) {
    %c1_i32 = arith.constant 1 : i32
    %0 = arith.muli %arg0, %c1_i32 : i32
    %1 = arith.addi %0, %arg1 : i32
    %c0_i32 = arith.constant 0 : i32
    %2 = arith.minsi %1, %c0_i32 : i32
    %c0_i32_0 = arith.constant 0 : i32
    %c0_i32_1 = arith.constant 0 : i32
    return %2, %c0_i32_0 : i32, i32
  }
  func.func @transform_1(%arg0: i32, %arg1: i32) -> (i32, i32) {
    %c1_i32 = arith.constant 1 : i32
    %0 = arith.muli %arg0, %c1_i32 : i32
    %1 = arith.addi %0, %arg1 : i32
    %c0_i32 = arith.constant 0 : i32
    %2 = arith.minsi %1, %c0_i32 : i32
    %c0_i32_0 = arith.constant 0 : i32
    %c0_i32_1 = arith.constant 0 : i32
    return %2, %c0_i32_0 : i32, i32
  }
  func.func @transform_2(%arg0: i32, %arg1: i32) -> (i32, i32) {
    %c0_i32 = arith.constant 0 : i32
    %c0_i32_0 = arith.constant 0 : i32
    return %arg0, %c0_i32 : i32, i32
  }
}

</mosaic_0001>

<bundles_post_ra>
// kernel: tpu_custom_call.1
= control target key start
LH: loop header
LB: loop body
LE: loop exit
PB: predicated region body
PF: predicated region fallthrough
CT: control target
= control target key end

     0   :  { %7 = vsyncpa [#allocation3], 0  ;;  %s255_s0 = inlined_call_operand.hbm [shape: f32[16,128], index: 0, kind: input, shape index: {}]   ;;  %s256_s1 = inlined_call_operand.hbm [shape: f32[16,128], index: 1, kind: input, shape index: {}]   ;;  %s257_s2 = inlined_call_operand.hbm [shape: f32[8,128], index: 2, kind: output, shape index: {}]  }
   0x1   :  { %8 = vsyncpa [#allocation6], 0 }
   0x2   :  { %9 = vsyncpa [#allocation4], 0  ;;  %s199_s9 = smov [#allocation2]   ;;  %s127_s13 = scalar_lea.hbm %s255_s0, 256 }
   0x3   :  { %s21_s10 = sshll.u32 %s199_s9, 4  ;;  %p128_p0 = scmp.ne.s32.totalorder %s255_s0, %s127_s13  ;;  %s22_s10 = int_to_ptr.vmem [resolvable:$true] %s21_s10 }
   0x4   :  { %p131_p1 = scmp.lt.u32.totalorder %s127_s13, %s255_s0 }
   0x6   :  { %p133_p2 = pnand %p131_p1, %p128_p0 }
   0x8   :  { %136 = shalt.err (!%p133_p2)
}
   0x9   :  { %s137_s18 = scalar_lea.vmem %s22_s10, 256  ;;  %p142_p4 = scmp.lt.s32.totalorder %s22_s10, %s22_s10 }
   0xa   :  { %p138_p3 = scmp.ne.s32.totalorder %s22_s10, %s137_s18  ;;  %p143_p5 = scmp.lt.s32.totalorder %s137_s18, %s137_s18 }
   0xc   :  { %p144_p6 = por %p143_p5, %p142_p4 }
   0xe   :  { %p145_p7 = pnand %p144_p6, %p138_p3 }
  0x10   :  { %148 = shalt.err (!%p145_p7)
}
  0x11   :  { %s200_s19 = smov 128   ;;  %s201_s20 = smov 8  }
  0x12   :  { %27 = dma.hbm_to_vmem [thread:$0]  %s255_s0, 256, %s22_s10, [#allocation3], %s200_s19, %s200_s19, %s201_s20  }
  0x13   :  { %s202_s23 = smov [#allocation5]   ;;  %s149_s27 = scalar_lea.hbm %s256_s1, 256 }
  0x14   :  { %s39_s24 = sshll.u32 %s202_s23, 4  ;;  %p150_p8 = scmp.ne.s32.totalorder %s256_s1, %s149_s27  ;;  %s40_s24 = int_to_ptr.vmem [resolvable:$true] %s39_s24 }
  0x15   :  { %p153_p9 = scmp.lt.u32.totalorder %s149_s27, %s256_s1 }
  0x17   :  { %p155_p10 = pnand %p153_p9, %p150_p8 }
  0x19   :  { %158 = shalt.err (!%p155_p10)
}
  0x1a   :  { %s159_s4 = scalar_lea.vmem %s40_s24, 256  ;;  %p164_p12 = scmp.lt.s32.totalorder %s40_s24, %s40_s24 }
  0x1b   :  { %p160_p11 = scmp.ne.s32.totalorder %s40_s24, %s159_s4  ;;  %p165_p13 = scmp.lt.s32.totalorder %s159_s4, %s159_s4 }
  0x1d   :  { %p166_p0 = por %p165_p13, %p164_p12 }
  0x1f   :  { %p167_p1 = pnand %p166_p0, %p160_p11 }
  0x21   :  { %170 = shalt.err (!%p167_p1)
}
  0x22   :  { %45 = dma.hbm_to_vmem [thread:$0]  %s256_s1, 256, %s40_s24, [#allocation6], %s200_s19, %s200_s19, %s201_s20  }
  0x23   :  { %193 = dma.done.wait [#allocation3], 256  }
  0x24   :  { %194 = vsyncadd [#allocation3], 4294967040 }
  0x25   :  { %195 = dma.done.wait [#allocation6], 256  }
  0x26   :  { %196 = vsyncadd [#allocation6], 4294967040  ;;  %v65_v0 = vld [vmem:[#allocation2] sm:$0xff]  ;;  %v66_v1 = vld [vmem:[#allocation2 + $0x8] sm:$0xff]  ;;  %s203_s1 = smov [#allocation7]  }
  0x27   :  { %v67_v2 = vld [vmem:[#allocation5] sm:$0xff]  ;;  %v68_v3 = vld [vmem:[#allocation5 + $0x8] sm:$0xff]  ;;  %v71_v4 = vsub.f32 1.0, %v65_v0  ;;  %v72_v5 = vsub.f32 1.0, %v66_v1  ;;  %s103_s6 = sshll.u32 %s203_s1, 4  ;;  %s104_s6 = int_to_ptr.vmem [resolvable:$true] %s103_s6 }
  0x28   :  { %vm69_vm0 = vcmp.ne.f32.partialorder %v67_v2, 0.0  ;;  %vm70_vm1 = vcmp.ne.f32.partialorder %v68_v3, 0.0  ;;  %s171_s7 = scalar_lea.vmem %s104_s6, 128  ;;  %p176_p3 = scmp.lt.s32.totalorder %s104_s6, %s104_s6 }
  0x29   :  { %v73_v6 = vsel %vm69_vm0, %v65_v0, %v71_v4  ;;  %v74_v7 = vsel %vm70_vm1, %v66_v1, %v72_v5  ;;  %p172_p2 = scmp.ne.s32.totalorder %s104_s6, %s171_s7  ;;  %p177_p4 = scmp.lt.s32.totalorder %s171_s7, %s171_s7 }
  0x2a   :  { %123 = vlog2.f32 %v73_v6  ;;  %v83_v8 = vsub.f32 1.0, %v73_v6  ;;  %v84_v9 = vsub.f32 1.0, %v74_v7 }
  0x2b   :  { %125 = vlog2.f32 %v74_v7  ;;  %p178_p5 = por %p177_p4, %p176_p3 }
  0x2c   :  { %v85_v10 = vmul.f32 %v83_v8, %v83_v8  ;;  %v86_v11 = vmul.f32 %v84_v9, %v84_v9 }
  0x2d   :  { %p179_p6 = pnand %p178_p5, %p172_p2 }
  0x2e   :  { %v87_v12 = vmul.f32 %v85_v10, %v85_v10  ;;  %v88_v14 = vmul.f32 %v86_v11, %v86_v11 }
  0x30   :  { %v89_v19 = vmul.f32 0.5, %v87_v12  ;;  %v90_v21 = vmul.f32 0.5, %v88_v14 }
  0x34   :  { %v124_v13 = vpop.eup %123 }
  0x35   :  { %v126_v15 = vpop.eup %125  ;;  %v76_v16 = vmul.f32 0.6931472, %v124_v13 }
  0x36   :  { %v78_v17 = vmul.f32 0.6931472, %v126_v15 }
  0x37   :  { %v79_v18 = vmax.f32 %v76_v16, -100.0 }
  0x38   :  { %v80_v20 = vmax.f32 %v78_v17, -100.0 }
  0x39   :  { %v81_v22 = vsub.f32 0.0, %v79_v18 }
  0x3a   :  { %v82_v23 = vsub.f32 0.0, %v80_v20 }
  0x3b   :  { %v91_v24 = vmul.f32 %v89_v19, %v81_v22 }
  0x3c   :  { %v92_v25 = vmul.f32 %v90_v21, %v82_v23 }
  0x3e   :  { %v94_v26 = vadd.f32 %v92_v25, %v91_v24 }
  0x40   :  { %96 = vst [vmem:[#allocation7] sm:$0xff] %v94_v26 }
  0x41   :  { %182 = shalt.err (!%p179_p6)
}
  0x42   :  { %s183_s10 = scalar_lea.hbm %s257_s2, 128 }
  0x43   :  { %p184_p7 = scmp.ne.s32.totalorder %s257_s2, %s183_s10  ;;  %p187_p8 = scmp.lt.u32.totalorder %s183_s10, %s257_s2 }
  0x45   :  { %p189_p9 = pnand %p187_p8, %p184_p7 }
  0x47   :  { %192 = shalt.err (!%p189_p9)
}
  0x48   :  { %106 = dma.vmem_to_hbm [thread:$0]  %s104_s6, 128, %s257_s2, [#allocation4]  }
  0x49   :  { %197 = dma.done.wait [#allocation4], 128  }
  0x4a   :  { %198 = vsyncadd [#allocation4], 4294967168 }
  0x4b   :  { %110 = vsyncpa [#allocation3], 1 }
  0x4c   :  { %111 = vsyncpa [#allocation6], 1 }
  0x4d   :  { %112 = vsyncpa [#allocation4], 1 }

</bundles_post_ra>
